<compile_context>
chip_gen: v7x
topology: tpu7x:2x2x1
jax: 0.10.0
libtpu: 0.0.40
codegen_flags: <defaults>
</compile_context>

<pallas_src>
import jax
import jax.numpy as jnp
from jax.experimental import pallas as pl
from jax.experimental.pallas import tpu as pltpu


# --------------------------------------------------------------------------- #
# Kernel
# --------------------------------------------------------------------------- #
def _make_kernel(use_lengths, bL, nL):
    """Fused masked-softmax + weighted-average kernel.

    Grid: (B/bB, H/bH, L/bL) with semantics (parallel, arbitrary, arbitrary).
      first_ref : (bB, 1) int32 lengths   OR   (bB, L) binary mask
      w_ref     : (bB, L)  gathered embedding weights (native dtype)
      v_ref     : (bB, bL, bH) values (native dtype)
      out_ref   : (bB, bH)
      sm_ref    : (bB, L)  f32 scratch -- softmax * mask, cached across H/L tiles
      acc_ref   : (bB, bH) f32 scratch -- accumulator over the L axis
    """

    def kernel(first_ref, w_ref, v_ref, out_ref, sm_ref, acc_ref):
        hi = pl.program_id(1)
        li = pl.program_id(2)

        # ---- masked softmax, computed once per batch tile ------------------
        @pl.when(jnp.logical_and(hi == 0, li == 0))
        def _compute_softmax():
            w = w_ref[...].astype(jnp.float32)                       # (bB, L)
            if use_lengths:
                pos = jax.lax.broadcasted_iota(jnp.int32, w.shape, 1)
                maskf = (pos < first_ref[...]).astype(jnp.float32)   # prefix mask in-kernel
            else:
                maskf = (first_ref[...] != 0).astype(jnp.float32)
            # -1e30 instead of -inf: fully-masked rows yield 0, not NaN (documented
            # deviation from torch masked_fill(-inf) + softmax).
            logits = jnp.where(maskf > 0, w, jnp.float32(-1e30))
            mx = jnp.max(logits, axis=1, keepdims=True)
            p = jnp.exp(logits - mx)
            denom = jnp.sum(p, axis=1, keepdims=True)
            sm_ref[...] = p * pl.reciprocal(denom, approx=True) * maskf

        # ---- accumulate over L (VPU multiply + f32 sublane reduce) ---------
        @pl.when(li == 0)
        def _init_acc():
            acc_ref[...] = jnp.zeros_like(acc_ref)

        if nL == 1:
            sm = sm_ref[...]                                         # (bB, L) f32
        else:
            start = pl.multiple_of(li * bL, 128)                     # bL is a multiple of 128
            sm = sm_ref[:, pl.ds(start, bL)]                         # (bB, bL) f32
        # f32 weights * native-dtype values promotes to f32: no weight quantization,
        # no M=1 MXU matmul -- pure VPU filler hidden under the values DMA.
        prod = sm[:, :, None] * v_ref[...]                           # (bB, bL, bH) f32
        acc_ref[...] += jnp.sum(prod, axis=1)

        @pl.when(li == nL - 1)
        def _finalize():
            out_ref[...] = acc_ref[...].astype(out_ref.dtype)

    return kernel


# --------------------------------------------------------------------------- #
# Tiling helpers
# --------------------------------------------------------------------------- #
def _round_up(x, m):
    return -(-x // m) * m


def _vmem_capacity_bytes():
    try:
        return int(pltpu.get_tpu_info().vmem_capacity_bytes)
    except Exception:
        return 64 * 1024 * 1024  # conservative: v7x per-TC VMEM


def _padded_block_bytes(shape, dtype):
    """Approx VMEM footprint of a block incl. lane / (packed) sublane padding."""
    itemsize = jnp.dtype(dtype).itemsize
    pack = max(1, 4 // itemsize)          # sublane packing: 1 (f32) / 2 (bf16) / 4 (i8)
    dims = list(shape)
    if len(dims) >= 1:
        dims[-1] = _round_up(dims[-1], 128)
    if len(dims) >= 2:
        dims[-2] = _round_up(dims[-2], 8 * pack)
    n = 1
    for d in dims:
        n *= int(d)
    return n * itemsize


def _divisors_desc(n, align):
    return [d for d in range(align, n + 1, align) if n % d == 0][::-1]


def _vmem_estimate(bB, bL, bH, L, v_dtype, out_dtype, w_dtype,
                   first_block_shape, first_dtype, v_buffers):
    total = v_buffers * _padded_block_bytes((bB, bL, bH), v_dtype)     # values stream
    total += 2 * _padded_block_bytes((bB, L), w_dtype)                 # gathered weights
    total += 2 * _padded_block_bytes(first_block_shape, first_dtype)   # lengths / mask
    total += 2 * _padded_block_bytes((bB, bH), out_dtype)              # output block
    total += _padded_block_bytes((bB, L), jnp.float32)                 # softmax scratch
    total += _padded_block_bytes((bB, bH), jnp.float32)                # accumulator
    # in-kernel f32 cast + product intermediates of the VPU reduce
    total += 2 * _padded_block_bytes((bB, bL, bH), jnp.float32)
    return total


def _choose_tiles(Bp, L, Hp, estimate_fn, budget):
    """Priority: lane-dense bH (prefer full H) > full/large bL (long DMA segments)
    > bB.  Returns the first combination that fits the VMEM budget."""
    bh_opts = _divisors_desc(Hp, 128)
    bl_opts = [L] + [d for d in _divisors_desc(L, 128) if d != L]
    bb_opts = [d for d in _divisors_desc(Bp, 8) if d <= 512] or [Bp]
    if Bp >= 16:  # keep >= 2 B-steps so the megacore (v7x) can shard the B axis
        bb_opts = [d for d in bb_opts if d <= Bp // 2] or bb_opts

    best = None
    for bH in bh_opts:
        for bL in bl_opts:
            for bB in bb_opts:
                est = estimate_fn(bB, bL, bH)
                if est <= budget:
                    return bB, bL, bH
                if best is None or est < best[0]:
                    best = (est, bB, bL, bH)
    return best[1], best[2], best[3]


# --------------------------------------------------------------------------- #
# Wrapper
# --------------------------------------------------------------------------- #
def embedding_weighted_average(inp, values, weight_table, lengths=None, mask=None,
                               max_tile_vmem_bytes=None):
    """JAX/Pallas port of EmbeddingWeightedAverage.forward.

    inp:          (B, L) int32 token ids
    values:       (B, L, H) float (any float dtype; streamed natively)
    weight_table: (V, 1) embedding table (embedding_dim = 1)
    lengths:      (B,) or (B, 1) int, optional
    mask:         (B, L) optional binary mask
    returns:      (B, H) in values.dtype
    """
    B, L = inp.shape
    H = values.shape[-1]
    out_dtype = values.dtype

    if mask is None and lengths is None:
        raise ValueError("mask and lengths cannot be None at the same time!")

    # Embedding lookup (V, 1) -> (B, L); kept in the table's dtype (cast in-kernel).
    # TODO(synk): fuse the gather in-kernel (VMEM-resident table) if it ever dominates.
    w_gathered = jnp.take(weight_table[:, 0], inp, axis=0)

    # ---- pad B / H to (8, 128)-friendly shapes; padding is sliced off at the end.
    Bp = _round_up(B, 8)
    Hp = _round_up(H, 128)
    pad_b, pad_h = Bp - B, Hp - H
    values_p = values
    if pad_b or pad_h:
        values_p = jnp.pad(values, ((0, pad_b), (0, 0), (0, pad_h)))
    w_p = jnp.pad(w_gathered, ((0, pad_b), (0, 0))) if pad_b else w_gathered

    if mask is None:
        first = jnp.asarray(lengths).reshape(B, 1).astype(jnp.int32)
        if pad_b:
            first = jnp.pad(first, ((0, pad_b), (0, 0)))   # padded rows fully masked
        first_block_shape = lambda bB: (bB, 1)
        use_lengths = True
    else:
        first = jnp.asarray(mask)
        if jnp.dtype(first.dtype).itemsize != 4:
            first = first.astype(jnp.int32)  # avoid sub-32-bit tiling corner cases
        if pad_b:
            first = jnp.pad(first, ((0, pad_b), (0, 0)))
        first_block_shape = lambda bB: (bB, L)
        use_lengths = False

    # ---- generation-aware VMEM budget & tile selection ------------------------
    vmem_cap = _vmem_capacity_bytes()                       # 64 MiB (v7x) / 128 MiB (v5e/v6e)
    vmem_limit = min((vmem_cap * 3) // 4, 96 * 1024 * 1024)
    budget = int(vmem_limit * 0.85)
    if max_tile_vmem_bytes is not None:                     # test hook / manual override
        budget = min(budget, int(max_tile_vmem_bytes))

    def est(bB, bL, bH, v_buffers=2):
        return _vmem_estimate(bB, bL, bH, L, values_p.dtype, out_dtype, w_p.dtype,
                              first_block_shape(bB), first.dtype, v_buffers)

    bB, bL, bH = _choose_tiles(Bp, L, Hp, est, budget)
    nB, nH, nL = Bp // bB, Hp // bH, L // bL
    grid = (nB, nH, nL)

    # ---- BlockSpecs ------------------------------------------------------------
    v_block = (bB, bL, bH)
    v_idx = lambda bi, hi, li: (bi, li, hi)
    v_spec = pl.BlockSpec(v_block, v_idx)
    v_block_bytes = _padded_block_bytes(v_block, values_p.dtype)
    # Deeper buffering hides per-step DMA latency when per-step blocks are small.
    if (nB * nH * nL > 2 and v_block_bytes < 512 * 1024
            and est(bB, bL, bH, v_buffers=3) <= budget):
        try:
            v_spec = pl.BlockSpec(v_block, v_idx, pipeline_mode=pl.Buffered(3))
        except TypeError:
            v_spec = pl.BlockSpec(v_block, v_idx)

    in_specs = [
        pl.BlockSpec(first_block_shape(bB), lambda bi, hi, li: (bi, 0)),   # lengths / mask
        pl.BlockSpec((bB, L), lambda bi, hi, li: (bi, 0)),                 # gathered weights
        v_spec,                                                            # values stream
    ]
    out_spec = pl.BlockSpec((bB, bH), lambda bi, hi, li: (bi, hi))

    kernel = _make_kernel(use_lengths, bL, nL)

    out = pl.pallas_call(
        kernel,
        out_shape=jax.ShapeDtypeStruct((Bp, Hp), out_dtype),
        grid=grid,
        in_specs=in_specs,
        out_specs=out_spec,
        scratch_shapes=[
            pltpu.VMEM((bB, L), jnp.float32),    # cached softmax * mask (per batch tile)
            pltpu.VMEM((bB, bH), jnp.float32),   # f32 accumulator over the L axis
        ],
        compiler_params=pltpu.CompilerParams(
            # B tiles independent -> megacore shards them on v7x; H/L carry VMEM state.
            dimension_semantics=("parallel", "arbitrary", "arbitrary"),
            vmem_limit_bytes=int(vmem_limit),
        ),
    )(first, w_p, values_p)

    return out[:B, :H]


# --------------------------------------------------------------------------- #
# Module setup helper + pure-JAX reference
# --------------------------------------------------------------------------- #
def make_weight_table(weights_mode, vocab_size, key=None):
    """Mirrors EmbeddingWeightedAverage.__init__ weight setup (no file loading)."""
    if weights_mode == "uniform":
        return jnp.ones((vocab_size, 1), dtype=jnp.float32)
    elif weights_mode == "random":
        # torch.nn.Embedding default init is N(0, 1)
        return jax.random.normal(key, (vocab_size, 1), dtype=jnp.float32)
    else:
        raise IOError(
            "(EmbeddingWeightedAverage) pickle-file weights not supported in this "
            "synthetic kernel script."
        )


def _reference(inp, values, weight_table, lengths):
    B, L = inp.shape
    pos = jnp.arange(L)[None, :]
    mask = (pos < lengths[:, None]).astype(jnp.float32)
    w = weight_table[:, 0][inp].astype(jnp.float32)
    logits = jnp.where(mask > 0, w, -jnp.inf)
    sm = jax.nn.softmax(logits, axis=1)
    return jnp.sum((sm * mask)[:, :, None] * values.astype(jnp.float32), axis=1)


# --------------------------------------------------------------------------- #
# Test
# --------------------------------------------------------------------------- #
if __name__ == "__main__":
    key = jax.random.PRNGKey(0)
    k_inp, k_val, k_w, k_inp2, k_val2 = jax.random.split(key, 5)

    V = 50
    weight_table = make_weight_table("random", V, key=k_w)

    # --- config 1: tiny shapes, both lengths- and mask- paths -----------------
    B, L, H = 2, 8, 32
    inp = jax.random.randint(k_inp, (B, L), 0, V, dtype=jnp.int32)
    values = jax.random.normal(k_val, (B, L, H), dtype=jnp.float32)
    lengths = jnp.array([5, 8], dtype=jnp.int32)

    out = jax.block_until_ready(
        embedding_weighted_average(inp, values, weight_table, lengths=lengths))

    pos = jnp.arange(L)[None, :]
    mask = (pos < lengths[:, None]).astype(jnp.float32)
    out_mask = jax.block_until_ready(
        embedding_weighted_average(inp, values, weight_table, mask=mask))

    ref = _reference(inp, values, weight_table, lengths)
    assert out.shape == (B, H)
    assert jnp.allclose(out, ref, atol=1e-2, rtol=1e-2), "config1 lengths path mismatch"
    assert jnp.allclose(out_mask, ref, atol=1e-2, rtol=1e-2), "config1 mask path mismatch"

    # --- config 2: bf16 values, non-aligned B, forced H/L tiling (multi-tile path)
    B2, L2, H2 = 4, 256, 384
    inp2 = jax.random.randint(k_inp2, (B2, L2), 0, V, dtype=jnp.int32)
    values2 = jax.random.normal(k_val2, (B2, L2, H2), dtype=jnp.float32).astype(jnp.bfloat16)
    lengths2 = jnp.array([256, 100, 1, 17], dtype=jnp.int32)

    out2 = jax.block_until_ready(
        embedding_weighted_average(inp2, values2, weight_table, lengths=lengths2,
                                   max_tile_vmem_bytes=3 * 1024 * 1024))  # force tiling
    ref2 = _reference(inp2, values2.astype(jnp.float32), weight_table, lengths2)
    assert out2.shape == (B2, H2)
    assert jnp.allclose(out2.astype(jnp.float32), ref2, atol=3e-2, rtol=3e-2), \
        "config2 tiled path mismatch"

    print("KERNEL_OK")
</pallas_src>

<mosaic_0001>
module attributes {stable_mosaic.version = 11 : i64} {
  func.func @kernel(%arg0: i32, %arg1: i32, %arg2: i32, %arg3: memref<8x1xi32, #tpu.memory_space<vmem>>, %arg4: memref<8x8xf32, #tpu.memory_space<vmem>>, %arg5: memref<8x8x128xf32, #tpu.memory_space<vmem>>, %arg6: memref<8x128xf32, #tpu.memory_space<vmem>>, %arg7: memref<8x8xf32, #tpu.memory_space<vmem>>, %arg8: memref<8x128xf32, #tpu.memory_space<vmem>>) attributes {dimension_semantics = [#tpu.dimension_semantics<parallel>, #tpu.dimension_semantics<arbitrary>, #tpu.dimension_semantics<arbitrary>], iteration_bounds = array<i64: 1, 1, 1>, scalar_prefetch = 0 : i64, scratch_operands = 2 : i64, tpu.core_type = #tpu.core_type<tc>, window_params = [{transform_indices = @transform_0, window_bounds = array<i64: 8, 1>}, {transform_indices = @transform_1, window_bounds = array<i64: 8, 8>}, {transform_indices = @transform_2, window_bounds = array<i64: 8, 8, 128>}, {transform_indices = @transform_3, window_bounds = array<i64: 8, 128>}]} {
    %c0_i32 = arith.constant 0 : i32
    %0 = arith.cmpi eq, %arg1, %c0_i32 : i32
    %c0_i32_0 = arith.constant 0 : i32
    %1 = arith.cmpi eq, %arg2, %c0_i32_0 : i32
    %2 = arith.andi %0, %1 : i1
    %3 = arith.extui %2 : i1 to i32
    %c0_i32_1 = arith.constant 0 : i32
    %4 = arith.cmpi ne, %3, %c0_i32_1 : i32
    scf.if %4 {
      %c0_14 = arith.constant 0 : index
      %c0_15 = arith.constant 0 : index
      %20 = vector.load %arg4[%c0_14, %c0_15] : memref<8x8xf32, #tpu.memory_space<vmem>>, vector<8x8xf32>
      %21 = tpu.iota {dimensions = array<i32: 1>} : vector<8x8xi32>
      %c0_16 = arith.constant 0 : index
      %c0_17 = arith.constant 0 : index
      %22 = vector.load %arg3[%c0_16, %c0_17] : memref<8x1xi32, #tpu.memory_space<vmem>>, vector<8x1xi32>
      %23 = vector.broadcast %22 : vector<8x1xi32> to vector<8x8xi32>
      %24 = arith.cmpi slt, %21, %23 : vector<8x8xi32>
      %25 = arith.extui %24 : vector<8x8xi1> to vector<8x8xi32>
      %26 = arith.sitofp %25 : vector<8x8xi32> to vector<8x8xf32>
      %cst_18 = arith.constant 0.000000e+00 : f32
      %27 = vector.broadcast %cst_18 : f32 to vector<8x8xf32>
      %28 = arith.cmpf ogt, %26, %27 : vector<8x8xf32>
      %cst_19 = arith.constant -1.000000e+30 : f32
      %29 = vector.broadcast %cst_19 : f32 to vector<8x8xf32>
      %30 = arith.select %28, %20, %29 : vector<8x8xi1>, vector<8x8xf32>
      %cst_20 = arith.constant dense<0xFF800000> : vector<8xf32>
      %31 = vector.multi_reduction <maximumf>, %30, %cst_20 [1] : vector<8x8xf32> to vector<8xf32>
      %32 = vector.shape_cast %31 : vector<8xf32> to vector<8x1xf32>
      %33 = vector.broadcast %32 : vector<8x1xf32> to vector<8x8xf32>
      %34 = arith.subf %30, %33 : vector<8x8xf32>
      %35 = math.exp %34 : vector<8x8xf32>
      %cst_21 = arith.constant dense<0.000000e+00> : vector<8xf32>
      %36 = vector.multi_reduction <add>, %35, %cst_21 [1] : vector<8x8xf32> to vector<8xf32>
      %37 = vector.shape_cast %36 : vector<8xf32> to vector<8x1xf32>
      %38 = tpu.reciprocal %37 {approx = true} : vector<8x1xf32> -> vector<8x1xf32>
      %39 = vector.broadcast %38 : vector<8x1xf32> to vector<8x8xf32>
      %40 = arith.mulf %35, %39 : vector<8x8xf32>
      %41 = arith.mulf %40, %26 : vector<8x8xf32>
      %c0_22 = arith.constant 0 : index
      %c0_23 = arith.constant 0 : index
      %42 = vector.load %arg7[%c0_22, %c0_23] : memref<8x8xf32, #tpu.memory_space<vmem>>, vector<8x8xf32>
      tpu.vector_store %arg7[%c0_22, %c0_23], %41 {strides = array<i32>} : memref<8x8xf32, #tpu.memory_space<vmem>>, vector<8x8xf32>,
    } else {
    }
    %c0_i32_2 = arith.constant 0 : i32
    %5 = arith.cmpi eq, %arg2, %c0_i32_2 : i32
    %6 = arith.extui %5 : i1 to i32
    %c0_i32_3 = arith.constant 0 : i32
    %7 = arith.cmpi ne, %6, %c0_i32_3 : i32
    scf.if %7 {
      %cst_14 = arith.constant 0.000000e+00 : f32
      %20 = vector.broadcast %cst_14 : f32 to vector<8x128xf32>
      %c0_15 = arith.constant 0 : index
      %c0_16 = arith.constant 0 : index
      %21 = vector.load %arg8[%c0_15, %c0_16] : memref<8x128xf32, #tpu.memory_space<vmem>>, vector<8x128xf32>
      tpu.vector_store %arg8[%c0_15, %c0_16], %20 {strides = array<i32>} : memref<8x128xf32, #tpu.memory_space<vmem>>, vector<8x128xf32>,
    } else {
    }
    %c0 = arith.constant 0 : index
    %c0_4 = arith.constant 0 : index
    %8 = vector.load %arg7[%c0, %c0_4] : memref<8x8xf32, #tpu.memory_space<vmem>>, vector<8x8xf32>
    %9 = vector.shape_cast %8 : vector<8x8xf32> to vector<8x8x1xf32>
    %c0_5 = arith.constant 0 : index
    %c0_6 = arith.constant 0 : index
    %c0_7 = arith.constant 0 : index
    %10 = vector.load %arg5[%c0_5, %c0_6, %c0_7] : memref<8x8x128xf32, #tpu.memory_space<vmem>>, vector<8x8x128xf32>
    %11 = vector.broadcast %9 : vector<8x8x1xf32> to vector<8x8x128xf32>
    %12 = arith.mulf %11, %10 : vector<8x8x128xf32>
    %c0_8 = arith.constant 0 : index
    %c0_9 = arith.constant 0 : index
    %13 = vector.load %arg8[%c0_8, %c0_9] : memref<8x128xf32, #tpu.memory_space<vmem>>, vector<8x128xf32>
    %cst = arith.constant dense<0.000000e+00> : vector<8x128xf32>
    %14 = vector.multi_reduction <add>, %12, %cst [1] : vector<8x8x128xf32> to vector<8x128xf32>
    %15 = arith.addf %13, %14 : vector<8x128xf32>
    %c0_10 = arith.constant 0 : index
    %c0_11 = arith.constant 0 : index
    %16 = vector.load %arg8[%c0_10, %c0_11] : memref<8x128xf32, #tpu.memory_space<vmem>>, vector<8x128xf32>
    tpu.vector_store %arg8[%c0_10, %c0_11], %15 {strides = array<i32>} : memref<8x128xf32, #tpu.memory_space<vmem>>, vector<8x128xf32>,
    %c0_i32_12 = arith.constant 0 : i32
    %17 = arith.cmpi eq, %arg2, %c0_i32_12 : i32
    %18 = arith.extui %17 : i1 to i32
    %c0_i32_13 = arith.constant 0 : i32
    %19 = arith.cmpi ne, %18, %c0_i32_13 : i32
    scf.if %19 {
      %c0_14 = arith.constant 0 : index
      %c0_15 = arith.constant 0 : index
      %20 = vector.load %arg8[%c0_14, %c0_15] : memref<8x128xf32, #tpu.memory_space<vmem>>, vector<8x128xf32>
      %c0_16 = arith.constant 0 : index
      %c0_17 = arith.constant 0 : index
      %21 = vector.load %arg6[%c0_16, %c0_17] : memref<8x128xf32, #tpu.memory_space<vmem>>, vector<8x128xf32>
      tpu.vector_store %arg6[%c0_16, %c0_17], %20 {strides = array<i32>} : memref<8x128xf32, #tpu.memory_space<vmem>>, vector<8x128xf32>,
    } else {
    }
    return
  }
  func.func @transform_0(%arg0: i32, %arg1: i32, %arg2: i32) -> (i32, i32) {
    %c0_i32 = arith.constant 0 : i32
    %c0_i32_0 = arith.constant 0 : i32
    return %arg0, %c0_i32 : i32, i32
  }
  func.func @transform_1(%arg0: i32, %arg1: i32, %arg2: i32) -> (i32, i32) {
    %c0_i32 = arith.constant 0 : i32
    %c0_i32_0 = arith.constant 0 : i32
    return %arg0, %c0_i32 : i32, i32
  }
  func.func @transform_2(%arg0: i32, %arg1: i32, %arg2: i32) -> (i32, i32, i32) {
    %c0_i32 = arith.constant 0 : i32
    return %arg0, %arg2, %arg1 : i32, i32, i32
  }
  func.func @transform_3(%arg0: i32, %arg1: i32, %arg2: i32) -> (i32, i32) {
    %c0_i32 = arith.constant 0 : i32
    return %arg0, %arg1 : i32, i32
  }
}

</mosaic_0001>

<bundles_post_ra>
// kernel: tpu_custom_call.1
= control target key start
LH: loop header
LB: loop body
LE: loop exit
PB: predicated region body
PF: predicated region fallthrough
CT: control target
= control target key end

     0   :  { %8 = vsyncpa [#allocation5], 0  ;;  %s351_s0 = inlined_call_operand.vmem [shape: s32[8,1], index: 0, kind: input, shape index: {}]   ;;  %s352_s1 = inlined_call_operand.vmem [shape: f32[8,8], index: 1, kind: input, shape index: {}]   ;;  %s353_s2 = inlined_call_operand.hbm [shape: f32[8,8,128], index: 2, kind: input, shape index: {}]   ;;  %s354_s3 = inlined_call_operand.hbm [shape: f32[8,128], index: 3, kind: output, shape index: {}]  }
   0x1   :  { %9 = vsyncpa [#allocation6], 0  ;;  %s292_s12 = smov [#allocation4]   ;;  %s244_s16 = scalar_lea.hbm %s353_s2, 1024 }
   0x2   :  { %s19_s13 = sshll.u32 %s292_s12, 4  ;;  %p245_p0 = scmp.ne.s32.totalorder %s353_s2, %s244_s16  ;;  %s20_s13 = int_to_ptr.vmem [resolvable:$true] %s19_s13 }
   0x3   :  { %p248_p1 = scmp.lt.u32.totalorder %s244_s16, %s353_s2 }
   0x5   :  { %p250_p2 = pnand %p248_p1, %p245_p0 }
   0x7   :  { %253 = shalt.err (!%p250_p2)
}
   0x8   :  { %s254_s21 = scalar_lea.vmem %s20_s13, 1024  ;;  %p259_p4 = scmp.lt.s32.totalorder %s20_s13, %s20_s13 }
   0x9   :  { %p255_p3 = scmp.ne.s32.totalorder %s20_s13, %s254_s21  ;;  %p260_p5 = scmp.lt.s32.totalorder %s254_s21, %s254_s21 }
   0xb   :  { %p261_p6 = por %p260_p5, %p259_p4 }
   0xd   :  { %p262_p7 = pnand %p261_p6, %p255_p3 }
   0xf   :  { %265 = shalt.err (!%p262_p7)
}
  0x10   :  { %s293_s22 = smov 128   ;;  %s294_s23 = smov 8  }
  0x11   :  { %25 = dma.hbm_to_vmem [thread:$0]  %s353_s2, 1024, %s20_s13, [#allocation5], %s293_s22, %s293_s22, %s294_s23  }
  0x12   :  { %288 = dma.done.wait [#allocation5], 1024  }
  0x13   :  { %289 = vsyncadd [#allocation5], 4294966272  ;;  %v295_v0 = vmov 0   ;;  %v38_v1 = vld [vmem:[%s351_s0] sm:$0xff]  ;;  %v36_v2 = vlaneseq  ;;  %v296_v6 = vmov 0.0   ;;  %vm47_vm1 = vcmask 64512  }
  0x14   :  { %239 = vset.pattern.permute.xlu0 %v295_v0  ;;  %v35_v5 = vld [vmem:[%s352_s1] sm:$0xff]  ;;  %v122_v38 = vld [vmem:[#allocation4] sm:$0xff]  ;;  %v124_v43 = vld [vmem:[#allocation4 + $0x10] sm:$0xff]  ;;  %vm195_vm3 = vcmask 1041409   ;;  %vm197_vm4 = vcmask 1042434   ;;  %vm199_vm5 = vcmask 1043459  }
  0x15   :  { %40 = vperm.xlu0 %239, %v38_v1   ;;  %v37_v3 = vand.u32 127, %v36_v2  ;;  %v67_v19 = vshrl.u32 %v36_v2, 7  ;;  %v123_v39 = vld [vmem:[#allocation4 + $0x8] sm:$0xff]  ;;  %v125_v53 = vld [vmem:[#allocation4 + $0x18] sm:$0xff]  ;;  %v126_v59 = vld [vmem:[#allocation4 + $0x20] sm:$0xff]  ;;  %vm201_vm6 = vcmask 1044484  }
  0x16   :  { %v127_v44 = vld [vmem:[#allocation4 + $0x28] sm:$0xff]  ;;  %vm203_vm7 = vcmask 1045509   ;;  %vm205_vm8 = vcmask 1046534   ;;  %s297_s0 = smov [#allocation7]   ;;  %vm207_vm9 = vcmask 1047559  }
  0x17   :  { %v103_v20 = vsub.s32 5, %v67_v19  ;;  %v68_v21 = vsub.s32 0, %v67_v19  ;;  %v75_v25 = vsub.s32 1, %v67_v19  ;;  %v82_v27 = vsub.s32 2, %v67_v19  ;;  %s223_s1 = sshll.u32 %s297_s0, 4  ;;  %s224_s1 = int_to_ptr.vmem [resolvable:$true] %s223_s1 }
  0x18   :  { %v89_v29 = vsub.s32 3, %v67_v19  ;;  %v96_v31 = vsub.s32 4, %v67_v19  ;;  %v110_v33 = vsub.s32 6, %v67_v19  ;;  %v117_v35 = vsub.s32 7, %v67_v19  ;;  %s266_s2 = scalar_lea.vmem %s224_s1, 128  ;;  %p271_p9 = scmp.lt.s32.totalorder %s224_s1, %s224_s1 }
  0x19   :  { %p267_p8 = scmp.ne.s32.totalorder %s224_s1, %s266_s2  ;;  %p272_p10 = scmp.lt.s32.totalorder %s266_s2, %s266_s2 }
  0x1b   :  { %p273_p11 = por %p272_p10, %p271_p9 }
  0x1d   :  { %p274_p12 = pnand %p273_p11, %p267_p8 }
  0x94   :  { %v41_v4 = vpop.permute.xlu0 %40 }
  0x95   :  { %vm42_vm0 = vcmp.lt.s32.totalorder %v37_v3, %v41_v4  ;;  %v128_v4 = vld [vmem:[#allocation4 + $0x30] sm:$0xff] }
  0x96   :  { %v232_v7 = vsel %vm42_vm0, 1.0, %v296_v6 }
  0x97   :  { %vm45_vm2 = vcmp.gt.f32.partialorder %v232_v7, 0.0 }
  0x98   :  { %v46_v8 = vsel %vm45_vm2, %v35_v5, -1e+30 }
  0x99   :  { %v48_v9 = vsel %vm47_vm1, %v46_v8, -inf }
  0x9a   :  { %49 = vmax.xlane.f32.xlu0 %v48_v9 }
 0x127   :  { %v50_v10 = vpop.xlane.xlu0 %49 }
 0x128   :  { %v51_v11 = vsub.f32 %v46_v8, %v50_v10 }
 0x12a   :  { %v52_v12 = vmul.f32 1.442695, %v51_v11 }
 0x12c   :  { %240 = vpow2.f32 %v52_v12 }
 0x136   :  { %v241_v13 = vpop.eup %240 }
 0x137   :  { %v54_v14 = vsel %vm47_vm1, %v241_v13, 0.0 }
 0x138   :  { %55 = vadd.xlane.f32.xlu1 %v54_v14 }
 0x1c5   :  { %v56_v15 = vpop.xlane.xlu1 %55 }
 0x1c6   :  { %242 = vrcp.f32 %v56_v15  ;;  %v129_v15 = vld [vmem:[#allocation4 + $0x38] sm:$0xff] }
 0x1d0   :  { %v243_v16 = vpop.eup %242 }
 0x1d1   :  { %v58_v17 = vmul.f32 %v243_v16, %v241_v13 }
 0x1d3   :  { %v59_v18 = vmul.f32 %v232_v7, %v58_v17 }
 0x1d5   :  { %60 = vst.msk [vmem:[#allocation2] sm:$0xff] %vm47_vm1, %v59_v18 }
 0x1dc   :  { %v65_v22 = vld [vmem:[#allocation2] sm:$0xff] }
 0x1dd   :  { %v104_v23 = vrot.slane %v65_v22, %v103_v20  ;;  %v69_v24 = vrot.slane %v65_v22, %v68_v21  ;;  %v76_v26 = vrot.slane %v65_v22, %v75_v25  ;;  %v83_v28 = vrot.slane %v65_v22, %v82_v27 }
 0x1de   :  { %v90_v30 = vrot.slane %v65_v22, %v89_v29  ;;  %v97_v32 = vrot.slane %v65_v22, %v96_v31  ;;  %v111_v34 = vrot.slane %v65_v22, %v110_v33  ;;  %v118_v36 = vrot.slane %v65_v22, %v117_v35 }
 0x1df   :  { %106 = vbcast.lane.b32.xlu0 %v104_v23, 256  ;;  %71 = vbcast.lane.b32.xlu1 %v69_v24, 256 }
 0x1e3   :  { %78 = vbcast.lane.b32.xlu1 %v76_v26, 256 }
 0x1e7   :  { %85 = vbcast.lane.b32.xlu1 %v83_v28, 256 }
 0x1eb   :  { %92 = vbcast.lane.b32.xlu1 %v90_v30, 256 }
 0x1ef   :  { %99 = vbcast.lane.b32.xlu1 %v97_v32, 256 }
 0x1f3   :  { %113 = vbcast.lane.b32.xlu1 %v111_v34, 256 }
 0x1f7   :  { %120 = vbcast.lane.b32.xlu1 %v118_v36, 256 }
 0x251   :  { %v72_v37 = vpop.permute.xlu1 %71  ;;  %v107_v45 = vpop.permute.xlu0 %106 }
 0x252   :  { %v130_v40 = vmul.f32 %v122_v38, %v72_v37  ;;  %v135_v50 = vmul.f32 %v127_v44, %v107_v45 }
 0x254   :  { %v139_v47 = vrot.slane %v130_v40, 4  ;;  %v169_v57 = vrot.slane %v135_v50, 4 }
 0x255   :  { %v79_v41 = vpop.permute.xlu1 %78 }
 0x256   :  { %v131_v42 = vmul.f32 %v123_v39, %v79_v41  ;;  %v140_v54 = vadd.f32 %v139_v47, %v130_v40  ;;  %v170_v2 = vadd.f32 %v169_v57, %v135_v50 }
 0x258   :  { %v145_v46 = vrot.slane %v131_v42, 4  ;;  %v141_v61 = vrot.slane %v140_v54, 2  ;;  %v171_v13 = vrot.slane %v170_v2, 2 }
 0x259   :  { %v86_v48 = vpop.permute.xlu1 %85 }
 0x25a   :  { %v132_v49 = vmul.f32 %v124_v43, %v86_v48  ;;  %v146_v51 = vadd.f32 %v145_v46, %v131_v42  ;;  %v142_v7 = vadd.f32 %v141_v61, %v140_v54  ;;  %v172_v26 = vadd.f32 %v171_v13, %v170_v2 }
 0x25c   :  { %v151_v52 = vrot.slane %v132_v49, 4  ;;  %v147_v60 = vrot.slane %v146_v51, 2  ;;  %v143_v19 = vrot.slane %v142_v7, 1  ;;  %v173_v37 = vrot.slane %v172_v26, 1 }
 0x25d   :  { %v93_v55 = vpop.permute.xlu1 %92 }
 0x25e   :  { %v152_v56 = vadd.f32 %v151_v52, %v132_v49  ;;  %v133_v58 = vmul.f32 %v125_v53, %v93_v55  ;;  %v148_v5 = vadd.f32 %v147_v60, %v146_v51  ;;  %v144_v32 = vadd.f32 %v143_v19, %v142_v7 }
 0x25f   :  { %v174_v46 = vadd.f32 %v173_v37, %v172_v26 }
 0x260   :  { %v153_v62 = vrot.slane %v152_v56, 2  ;;  %v157_v63 = vrot.slane %v133_v58, 4  ;;  %v149_v16 = vrot.slane %v148_v5, 1 }
 0x261   :  { %v100_v0 = vpop.permute.xlu1 %99 }
 0x262   :  { %v134_v1 = vmul.f32 %v126_v59, %v100_v0  ;;  %v158_v3 = vadd.f32 %v157_v63, %v133_v58  ;;  %v154_v8 = vadd.f32 %v153_v62, %v152_v56  ;;  %v150_v27 = vadd.f32 %v149_v16, %v148_v5 }
 0x264   :  { %v163_v6 = vrot.slane %v134_v1, 4  ;;  %v159_v9 = vrot.slane %v158_v3, 2  ;;  %v155_v20 = vrot.slane %v154_v8, 1  ;;  %v196_v38 = vsel %vm195_vm3, %v150_v27, %v144_v32 }
 0x265   :  { %v114_v10 = vpop.permute.xlu1 %113 }
 0x266   :  { %v164_v11 = vadd.f32 %v163_v6, %v134_v1  ;;  %v136_v12 = vmul.f32 %v128_v4, %v114_v10  ;;  %v160_v14 = vadd.f32 %v159_v9, %v158_v3  ;;  %v156_v31 = vadd.f32 %v155_v20, %v154_v8 }
 0x268   :  { %v165_v17 = vrot.slane %v164_v11, 2  ;;  %v175_v18 = vrot.slane %v136_v12, 4  ;;  %v161_v22 = vrot.slane %v160_v14, 1  ;;  %v198_v41 = vsel %vm197_vm4, %v156_v31, %v196_v38 }
 0x269   :  { %v121_v21 = vpop.permute.xlu1 %120 }
 0x26a   :  { %v166_v23 = vadd.f32 %v165_v17, %v164_v11  ;;  %v176_v24 = vadd.f32 %v175_v18, %v136_v12  ;;  %v137_v25 = vmul.f32 %v129_v15, %v121_v21  ;;  %v162_v33 = vadd.f32 %v161_v22, %v160_v14 }
 0x26c   :  { %v167_v28 = vrot.slane %v166_v23, 1  ;;  %v177_v29 = vrot.slane %v176_v24, 2  ;;  %v181_v30 = vrot.slane %v137_v25, 4  ;;  %v200_v42 = vsel %vm199_vm5, %v162_v33, %v198_v41 }
 0x26e   :  { %v178_v34 = vadd.f32 %v177_v29, %v176_v24  ;;  %v182_v35 = vadd.f32 %v181_v30, %v137_v25  ;;  %v168_v36 = vadd.f32 %v167_v28, %v166_v23 }
 0x270   :  { %v179_v39 = vrot.slane %v178_v34, 1  ;;  %v183_v40 = vrot.slane %v182_v35, 2  ;;  %v202_v45 = vsel %vm201_vm6, %v168_v36, %v200_v42 }
 0x271   :  { %v204_v49 = vsel %vm203_vm7, %v174_v46, %v202_v45 }
 0x272   :  { %v184_v43 = vadd.f32 %v183_v40, %v182_v35  ;;  %v180_v44 = vadd.f32 %v179_v39, %v178_v34 }
 0x274   :  { %v185_v47 = vrot.slane %v184_v43, 1  ;;  %v206_v50 = vsel %vm205_vm8, %v180_v44, %v204_v49 }
 0x276   :  { %v186_v48 = vadd.f32 %v185_v47, %v184_v43 }
 0x278   :  { %v208_v51 = vsel %vm207_vm9, %v186_v48, %v206_v50 }
 0x279   :  { %216 = vst [vmem:[#allocation7] sm:$0xff] %v208_v51 }
 0x27a   :  { %277 = shalt.err (!%p274_p12)
}
 0x27b   :  { %s278_s5 = scalar_lea.hbm %s354_s3, 128 }
 0x27c   :  { %p279_p13 = scmp.ne.s32.totalorder %s354_s3, %s278_s5  ;;  %p282_p0 = scmp.lt.u32.totalorder %s278_s5, %s354_s3 }
 0x27e   :  { %p284_p1 = pnand %p282_p0, %p279_p13 }
 0x280   :  { %287 = shalt.err (!%p284_p1)
}
 0x281   :  { %226 = dma.vmem_to_hbm [thread:$0]  %s224_s1, 128, %s354_s3, [#allocation6]  }
 0x282   :  { %290 = dma.done.wait [#allocation6], 128  }
 0x283   :  { %291 = vsyncadd [#allocation6], 4294967168 }
 0x284   :  { %230 = vsyncpa [#allocation5], 1 }
 0x285   :  { %231 = vsyncpa [#allocation6], 1 }

</bundles_post_ra>
